<compile_context>
chip_gen: v7x
topology: tpu7x:2x2x1
jax: 0.10.0
libtpu: 0.0.40
codegen_flags: <defaults>
</compile_context>

<pallas_src>
import functools

import jax
import jax.numpy as jnp
import numpy as np
from jax import lax
from jax.experimental import pallas as pl
from jax.experimental.pallas import tpu as pltpu

EPS = 1e-5
LANES = 128
SUBLANES = 16          # bf16 sublane packing -> keeps the dy row-slices aligned


def _round_up(v, m):
    return (v + m - 1) // m * m


def _vmem_need(TH, Wpad, Wo, Ci, Co_pad):
    """Rough per-step VMEM footprint (double-buffered blocks + kernel temporaries)."""
    lane = lambda c: _round_up(max(c, 1), LANES)
    M = TH * Wpad
    x_blk = 2 * 4 * (TH + 1) * Wpad * lane(Ci) * 2            # bf16 plane tiles
    w_blk = 2 * 4 * _round_up(2 * Ci, SUBLANES) * 2 * Co_pad * 2   # bf16 weights
    o_blk = 2 * TH * _round_up(Wo, SUBLANES) * Co_pad * 2     # bf16 output tile
    tmp = (M * lane(2 * Ci) * 2                               # concatenated lhs (bf16)
           + M * 2 * Co_pad * 4                               # matmul result (f32)
           + 2 * M * Co_pad * 4)                              # accumulator + epilogue (f32)
    return x_blk + w_blk + o_blk + tmp


# --------------------------------------------------------------------------------------
# Kernel: one (image, row-tile) per grid step.
#   x_ref     : (4, (TH+1)*Wpad, Ci)  bf16  -- 4 parity planes, row tile + 1-row halo,
#                                              spatially flattened (rows * Wpad)
#   w_ref     : (4, 2*Ci, 2*Co_pad)   bf16  -- dy taps packed along K, dx taps along N
#   scale/shift: (1, Co_pad)          f32   -- folded conv-bias + eval-mode BatchNorm
#   o_ref     : (TH, Wo, Co_pad)      bf16
# --------------------------------------------------------------------------------------
def _down_kernel(x_ref, w_ref, scale_ref, shift_ref, o_ref, *, TH, Wo, Wpad, Co_pad):
    M = TH * Wpad
    acc = jnp.zeros((M, Co_pad), jnp.float32)
    for p in range(4):                  # (row-parity, col-parity) plane of padded input
        # dy taps packed along K: rows [0, TH) and [1, TH+1) of the plane tile,
        # concatenated channel-wise.  Both slice offsets are multiples of Wpad (itself a
        # multiple of 16), so the loads are sublane-aligned.
        lhs = jnp.concatenate(
            [x_ref[p, 0:M, :], x_ref[p, Wpad:Wpad + M, :]], axis=1)      # (M, 2*Ci)
        r = jnp.dot(lhs, w_ref[p], preferred_element_type=jnp.float32)   # (M, 2*Co_pad)
        # dx=0 taps occupy the first Co_pad lanes, dx=1 the second half.  The dx=1 half
        # needs the value one W position ahead: roll by -1 (== M-1) along the flattened
        # (row*W) axis; wrapped/garbage rows land in columns >= Wo, cropped at the store.
        acc = acc + r[:, :Co_pad]
        acc = acc + pltpu.roll(r[:, Co_pad:], shift=M - 1, axis=0)
    y = acc * scale_ref[...] + shift_ref[...]      # conv bias + BatchNorm (eval) folded
    y = jnp.where(y >= 0, y, 0.2 * y)              # LeakyReLU(negative_slope=0.2)
    o_ref[...] = y.reshape(TH, Wpad, Co_pad)[:, :Wo, :].astype(o_ref.dtype)


# --------------------------------------------------------------------------------------
# Wrapper: Conv2d(k=4, s=2, p=1) + BatchNorm2d(eval) + LeakyReLU(0.2), NCHW in/out.
# --------------------------------------------------------------------------------------
def down_forward(x_nchw, W, b, gamma, beta, mean, var):
    N, Ci, H, Wd = x_nchw.shape
    Co = W.shape[0]
    assert H % 2 == 0 and Wd % 2 == 0, "k=4, s=2, p=1 conv expects even spatial dims"
    Ho, Wo = H // 2, Wd // 2
    Hp, Wp = Ho + 1, Wo + 1                    # each parity plane of the padded input
    Wpad = _round_up(Wp, SUBLANES)             # sublane-aligned plane width
    Co_pad = _round_up(Co, LANES)              # lane-dense output channels

    # ---- row-tile size + VMEM budget (tile-derived, generation-aware) -----------------
    TH = min(Ho, 32)
    while TH > 4 and _vmem_need(TH, Wpad, Wo, Ci, Co_pad) > (20 << 20):
        TH = max(4, TH // 2)
    Ho_pad = _round_up(Ho, TH)
    nT = Ho_pad // TH
    Hp_pad = Ho_pad + 1

    cap = 128 << 20
    try:
        cap = int(pltpu.get_tpu_info().vmem_capacity_bytes)
    except Exception:
        pass
    need = _vmem_need(TH, Wpad, Wo, Ci, Co_pad)
    vmem_limit = int(min(max(need + (8 << 20), 32 << 20), (cap * 3) // 4))

    # ---- input: NCHW -> NHWC bf16, pad=1, split into 4 parity planes, row-tile ---------
    x = jnp.transpose(x_nchw, (0, 2, 3, 1)).astype(jnp.bfloat16)
    xp = jnp.pad(x, ((0, 0), (1, 1), (1, 1), (0, 0)))                 # (N, 2*Hp, 2*Wp, Ci)
    # planes[p=2*ry+rx, n, I, J, c] = xp[n, 2I+ry, 2J+rx, c]
    planes = xp.reshape(N, Hp, 2, Wp, 2, Ci).transpose(2, 4, 0, 1, 3, 5)
    planes = planes.reshape(4, N, Hp, Wp, Ci)
    planes = jnp.pad(planes, ((0, 0), (0, 0), (0, Hp_pad - Hp), (0, Wpad - Wp), (0, 0)))
    if nT == 1:
        tiles = planes[:, :, None]                                    # (4,N,1,TH+1,Wpad,Ci)
    else:                                                             # overlapping row tiles
        tiles = jnp.stack([planes[:, :, t * TH:t * TH + TH + 1] for t in range(nT)], axis=2)
    tiles = tiles.reshape(4, N, nT, (TH + 1) * Wpad, Ci)

    # ---- weights: tap (ky,kx) = (2*dy+ry, 2*dx+rx); dy packed along K, dx along N ------
    blocks = []
    for p in range(4):
        ry, rx = divmod(p, 2)
        cols = []
        for dx in range(2):
            rows = [jnp.transpose(W[:, :, 2 * dy + ry, 2 * dx + rx]) for dy in range(2)]
            col = jnp.concatenate(rows, axis=0)                       # (2*Ci, Co)
            cols.append(jnp.pad(col, ((0, 0), (0, Co_pad - Co))))
        blocks.append(jnp.concatenate(cols, axis=1))                  # (2*Ci, 2*Co_pad)
    w_all = jnp.stack(blocks).astype(jnp.bfloat16)                    # (4, 2*Ci, 2*Co_pad)

    # ---- fold conv bias + eval-mode BatchNorm into one per-channel affine (f32) --------
    s = gamma / jnp.sqrt(var + EPS)
    scale = jnp.pad(s, (0, Co_pad - Co), constant_values=1.0).reshape(1, Co_pad)
    shift = jnp.pad((b - mean) * s + beta, (0, Co_pad - Co)).reshape(1, Co_pad)
    scale = scale.astype(jnp.float32)
    shift = shift.astype(jnp.float32)

    flops = 2 * N * Ho * Wo * 16 * Ci * Co
    bytes_accessed = (tiles.size * 2 + w_all.size * 2 + scale.size * 4 + shift.size * 4
                      + N * Ho_pad * Wo * Co_pad * 2)

    out = pl.pallas_call(
        functools.partial(_down_kernel, TH=TH, Wo=Wo, Wpad=Wpad, Co_pad=Co_pad),
        out_shape=jax.ShapeDtypeStruct((N, Ho_pad, Wo, Co_pad), jnp.bfloat16),
        grid=(N, nT),
        in_specs=[
            pl.BlockSpec((4, None, None, (TH + 1) * Wpad, Ci), lambda n, t: (0, n, t, 0, 0)),
            pl.BlockSpec((4, 2 * Ci, 2 * Co_pad), lambda n, t: (0, 0, 0)),
            pl.BlockSpec((1, Co_pad), lambda n, t: (0, 0)),
            pl.BlockSpec((1, Co_pad), lambda n, t: (0, 0)),
        ],
        out_specs=pl.BlockSpec((None, TH, Wo, Co_pad), lambda n, t: (n, t, 0, 0)),
        compiler_params=pltpu.CompilerParams(
            dimension_semantics=("parallel", "parallel"),
            vmem_limit_bytes=vmem_limit,
        ),
        cost_estimate=pl.CostEstimate(flops=int(flops), transcendentals=0,
                                      bytes_accessed=int(bytes_accessed)),
    )(tiles, w_all, scale, shift)

    out = out[:, :Ho, :, :Co].astype(jnp.float32)     # drop row/lane padding, back to f32
    return jnp.transpose(out, (0, 3, 1, 2))           # NHWC -> NCHW


# --------------------------------------------------------------------------------------
if __name__ == "__main__":
    key = jax.random.PRNGKey(0)
    k1, k2, k3, k4, k5, k6, k7 = jax.random.split(key, 7)

    N, in_ch, out_ch, H = 2, 4, 32, 16
    x = jax.random.normal(k1, (N, in_ch, H, H), jnp.float32)
    W = 0.05 * jax.random.normal(k2, (out_ch, in_ch, 4, 4), jnp.float32)
    b = 0.05 * jax.random.normal(k3, (out_ch,), jnp.float32)
    gamma = 1.0 + 0.1 * jax.random.normal(k4, (out_ch,), jnp.float32)
    beta = 0.1 * jax.random.normal(k5, (out_ch,), jnp.float32)
    mean = 0.1 * jax.random.normal(k6, (out_ch,), jnp.float32)
    var = 0.9 + 0.1 * jnp.abs(jax.random.normal(k7, (out_ch,), jnp.float32))

    fwd = jax.jit(down_forward)
    y = jax.block_until_ready(fwd(x, W, b, gamma, beta, mean, var))
    assert y.shape == (N, out_ch, H // 2, H // 2), y.shape
    assert bool(jnp.all(jnp.isfinite(y)))

    # Pure-JAX reference with the same bf16-quantized inputs (f32 conv + eval BN + lrelu).
    xq = x.astype(jnp.bfloat16).astype(jnp.float32)
    Wq = W.astype(jnp.bfloat16).astype(jnp.float32)
    ref = lax.conv_general_dilated(
        xq, Wq, window_strides=(2, 2), padding=((1, 1), (1, 1)),
        dimension_numbers=("NCHW", "OIHW", "NCHW"),
        precision=lax.Precision.HIGHEST,
    ) + b[None, :, None, None]
    ref = (ref - mean[None, :, None, None]) / jnp.sqrt(var[None, :, None, None] + EPS)
    ref = ref * gamma[None, :, None, None] + beta[None, :, None, None]
    ref = jnp.where(ref >= 0, ref, 0.2 * ref)

    err = float(jnp.max(jnp.abs(y - ref)))
    assert np.allclose(np.asarray(y), np.asarray(ref), atol=2e-2, rtol=2e-2), err

    print("KERNEL_OK")
</pallas_src>

<mosaic_0001>
module attributes {stable_mosaic.version = 11 : i64} {
  func.func @_down_kernel(%arg0: i32, %arg1: i32, %arg2: memref<4x1x1x144x4xbf16, #tpu.memory_space<vmem>>, %arg3: memref<4x8x256xbf16, #tpu.memory_space<vmem>>, %arg4: memref<1x128xf32, #tpu.memory_space<vmem>>, %arg5: memref<1x128xf32, #tpu.memory_space<vmem>>, %arg6: memref<1x8x8x128xbf16, #tpu.memory_space<vmem>>) attributes {dimension_semantics = [#tpu.dimension_semantics<parallel>, #tpu.dimension_semantics<parallel>], iteration_bounds = array<i64: 2, 1>, scalar_prefetch = 0 : i64, scratch_operands = 0 : i64, tpu.core_type = #tpu.core_type<tc>, window_params = [{transform_indices = @transform_0, window_bounds = array<i64: 4, 1, 1, 144, 4>}, {pipeline_mode = #tpu.pipeline_mode<synchronous>, transform_indices = @transform_1, window_bounds = array<i64: 4, 8, 256>}, {pipeline_mode = #tpu.pipeline_mode<synchronous>, transform_indices = @transform_2, window_bounds = array<i64: 1, 128>}, {pipeline_mode = #tpu.pipeline_mode<synchronous>, transform_indices = @transform_3, window_bounds = array<i64: 1, 128>}, {transform_indices = @transform_4, window_bounds = array<i64: 1, 8, 8, 128>}]} {
    %cst = arith.constant 0.000000e+00 : f32
    %0 = vector.broadcast %cst : f32 to vector<128x128xf32>
    %c0 = arith.constant 0 : index
    %c0_0 = arith.constant 0 : index
    %c0_1 = arith.constant 0 : index
    %c0_2 = arith.constant 0 : index
    %c0_3 = arith.constant 0 : index
    %1 = vector.load %arg2[%c0, %c0_0, %c0_1, %c0_2, %c0_3] : memref<4x1x1x144x4xbf16, #tpu.memory_space<vmem>>, vector<1x1x1x128x4xbf16>
    %2 = vector.shape_cast %1 : vector<1x1x1x128x4xbf16> to vector<128x4xbf16>
    %c0_4 = arith.constant 0 : index
    %c0_5 = arith.constant 0 : index
    %c0_6 = arith.constant 0 : index
    %c16 = arith.constant 16 : index
    %c0_7 = arith.constant 0 : index
    %3 = vector.load %arg2[%c0_4, %c0_5, %c0_6, %c16, %c0_7] : memref<4x1x1x144x4xbf16, #tpu.memory_space<vmem>>, vector<1x1x1x128x4xbf16>
    %4 = vector.shape_cast %3 : vector<1x1x1x128x4xbf16> to vector<128x4xbf16>
    %5 = tpu.concatenate %2, %4 in 1 : vector<128x4xbf16>, vector<128x4xbf16> -> vector<128x8xbf16>
    %c0_8 = arith.constant 0 : index
    %c0_9 = arith.constant 0 : index
    %c0_10 = arith.constant 0 : index
    %6 = vector.load %arg3[%c0_8, %c0_9, %c0_10] : memref<4x8x256xbf16, #tpu.memory_space<vmem>>, vector<1x8x256xbf16>
    %7 = vector.shape_cast %6 : vector<1x8x256xbf16> to vector<8x256xbf16>
    %cst_11 = arith.constant dense<0.000000e+00> : vector<128x256xf32>
    %8 = tpu.matmul %5, %7, %cst_11 {dimension_numbers = #tpu.dot_dimension_numbers<[1], [0], [0], [1], [0, 0, 1, 1], [], []>} : vector<128x8xbf16>, vector<8x256xbf16>, vector<128x256xf32> -> vector<128x256xf32>
    %9 = vector.extract_strided_slice %8 {offsets = [0, 0], sizes = [128, 128], strides = [1, 1]} : vector<128x256xf32> to vector<128x128xf32>
    %10 = arith.addf %0, %9 : vector<128x128xf32>
    %11 = vector.extract_strided_slice %8 {offsets = [0, 128], sizes = [128, 128], strides = [1, 1]} : vector<128x256xf32> to vector<128x128xf32>
    %c127_i32 = arith.constant 127 : i32
    %12 = tpu.dynamic_rotate %11 by %c127_i32 dim 0 : vector<128x128xf32>, i32 -> vector<128x128xf32>
    %13 = arith.addf %10, %12 : vector<128x128xf32>
    %c1 = arith.constant 1 : index
    %c0_12 = arith.constant 0 : index
    %c0_13 = arith.constant 0 : index
    %c0_14 = arith.constant 0 : index
    %c0_15 = arith.constant 0 : index
    %14 = vector.load %arg2[%c1, %c0_12, %c0_13, %c0_14, %c0_15] : memref<4x1x1x144x4xbf16, #tpu.memory_space<vmem>>, vector<1x1x1x128x4xbf16>
    %15 = vector.shape_cast %14 : vector<1x1x1x128x4xbf16> to vector<128x4xbf16>
    %c1_16 = arith.constant 1 : index
    %c0_17 = arith.constant 0 : index
    %c0_18 = arith.constant 0 : index
    %c16_19 = arith.constant 16 : index
    %c0_20 = arith.constant 0 : index
    %16 = vector.load %arg2[%c1_16, %c0_17, %c0_18, %c16_19, %c0_20] : memref<4x1x1x144x4xbf16, #tpu.memory_space<vmem>>, vector<1x1x1x128x4xbf16>
    %17 = vector.shape_cast %16 : vector<1x1x1x128x4xbf16> to vector<128x4xbf16>
    %18 = tpu.concatenate %15, %17 in 1 : vector<128x4xbf16>, vector<128x4xbf16> -> vector<128x8xbf16>
    %c1_21 = arith.constant 1 : index
    %c0_22 = arith.constant 0 : index
    %c0_23 = arith.constant 0 : index
    %19 = vector.load %arg3[%c1_21, %c0_22, %c0_23] : memref<4x8x256xbf16, #tpu.memory_space<vmem>>, vector<1x8x256xbf16>
    %20 = vector.shape_cast %19 : vector<1x8x256xbf16> to vector<8x256xbf16>
    %cst_24 = arith.constant dense<0.000000e+00> : vector<128x256xf32>
    %21 = tpu.matmul %18, %20, %cst_24 {dimension_numbers = #tpu.dot_dimension_numbers<[1], [0], [0], [1], [0, 0, 1, 1], [], []>} : vector<128x8xbf16>, vector<8x256xbf16>, vector<128x256xf32> -> vector<128x256xf32>
    %22 = vector.extract_strided_slice %21 {offsets = [0, 0], sizes = [128, 128], strides = [1, 1]} : vector<128x256xf32> to vector<128x128xf32>
    %23 = arith.addf %13, %22 : vector<128x128xf32>
    %24 = vector.extract_strided_slice %21 {offsets = [0, 128], sizes = [128, 128], strides = [1, 1]} : vector<128x256xf32> to vector<128x128xf32>
    %c127_i32_25 = arith.constant 127 : i32
    %25 = tpu.dynamic_rotate %24 by %c127_i32_25 dim 0 : vector<128x128xf32>, i32 -> vector<128x128xf32>
    %26 = arith.addf %23, %25 : vector<128x128xf32>
    %c2 = arith.constant 2 : index
    %c0_26 = arith.constant 0 : index
    %c0_27 = arith.constant 0 : index
    %c0_28 = arith.constant 0 : index
    %c0_29 = arith.constant 0 : index
    %27 = vector.load %arg2[%c2, %c0_26, %c0_27, %c0_28, %c0_29] : memref<4x1x1x144x4xbf16, #tpu.memory_space<vmem>>, vector<1x1x1x128x4xbf16>
    %28 = vector.shape_cast %27 : vector<1x1x1x128x4xbf16> to vector<128x4xbf16>
    %c2_30 = arith.constant 2 : index
    %c0_31 = arith.constant 0 : index
    %c0_32 = arith.constant 0 : index
    %c16_33 = arith.constant 16 : index
    %c0_34 = arith.constant 0 : index
    %29 = vector.load %arg2[%c2_30, %c0_31, %c0_32, %c16_33, %c0_34] : memref<4x1x1x144x4xbf16, #tpu.memory_space<vmem>>, vector<1x1x1x128x4xbf16>
    %30 = vector.shape_cast %29 : vector<1x1x1x128x4xbf16> to vector<128x4xbf16>
    %31 = tpu.concatenate %28, %30 in 1 : vector<128x4xbf16>, vector<128x4xbf16> -> vector<128x8xbf16>
    %c2_35 = arith.constant 2 : index
    %c0_36 = arith.constant 0 : index
    %c0_37 = arith.constant 0 : index
    %32 = vector.load %arg3[%c2_35, %c0_36, %c0_37] : memref<4x8x256xbf16, #tpu.memory_space<vmem>>, vector<1x8x256xbf16>
    %33 = vector.shape_cast %32 : vector<1x8x256xbf16> to vector<8x256xbf16>
    %cst_38 = arith.constant dense<0.000000e+00> : vector<128x256xf32>
    %34 = tpu.matmul %31, %33, %cst_38 {dimension_numbers = #tpu.dot_dimension_numbers<[1], [0], [0], [1], [0, 0, 1, 1], [], []>} : vector<128x8xbf16>, vector<8x256xbf16>, vector<128x256xf32> -> vector<128x256xf32>
    %35 = vector.extract_strided_slice %34 {offsets = [0, 0], sizes = [128, 128], strides = [1, 1]} : vector<128x256xf32> to vector<128x128xf32>
    %36 = arith.addf %26, %35 : vector<128x128xf32>
    %37 = vector.extract_strided_slice %34 {offsets = [0, 128], sizes = [128, 128], strides = [1, 1]} : vector<128x256xf32> to vector<128x128xf32>
    %c127_i32_39 = arith.constant 127 : i32
    %38 = tpu.dynamic_rotate %37 by %c127_i32_39 dim 0 : vector<128x128xf32>, i32 -> vector<128x128xf32>
    %39 = arith.addf %36, %38 : vector<128x128xf32>
    %c3 = arith.constant 3 : index
    %c0_40 = arith.constant 0 : index
    %c0_41 = arith.constant 0 : index
    %c0_42 = arith.constant 0 : index
    %c0_43 = arith.constant 0 : index
    %40 = vector.load %arg2[%c3, %c0_40, %c0_41, %c0_42, %c0_43] : memref<4x1x1x144x4xbf16, #tpu.memory_space<vmem>>, vector<1x1x1x128x4xbf16>
    %41 = vector.shape_cast %40 : vector<1x1x1x128x4xbf16> to vector<128x4xbf16>
    %c3_44 = arith.constant 3 : index
    %c0_45 = arith.constant 0 : index
    %c0_46 = arith.constant 0 : index
    %c16_47 = arith.constant 16 : index
    %c0_48 = arith.constant 0 : index
    %42 = vector.load %arg2[%c3_44, %c0_45, %c0_46, %c16_47, %c0_48] : memref<4x1x1x144x4xbf16, #tpu.memory_space<vmem>>, vector<1x1x1x128x4xbf16>
    %43 = vector.shape_cast %42 : vector<1x1x1x128x4xbf16> to vector<128x4xbf16>
    %44 = tpu.concatenate %41, %43 in 1 : vector<128x4xbf16>, vector<128x4xbf16> -> vector<128x8xbf16>
    %c3_49 = arith.constant 3 : index
    %c0_50 = arith.constant 0 : index
    %c0_51 = arith.constant 0 : index
    %45 = vector.load %arg3[%c3_49, %c0_50, %c0_51] : memref<4x8x256xbf16, #tpu.memory_space<vmem>>, vector<1x8x256xbf16>
    %46 = vector.shape_cast %45 : vector<1x8x256xbf16> to vector<8x256xbf16>
    %cst_52 = arith.constant dense<0.000000e+00> : vector<128x256xf32>
    %47 = tpu.matmul %44, %46, %cst_52 {dimension_numbers = #tpu.dot_dimension_numbers<[1], [0], [0], [1], [0, 0, 1, 1], [], []>} : vector<128x8xbf16>, vector<8x256xbf16>, vector<128x256xf32> -> vector<128x256xf32>
    %48 = vector.extract_strided_slice %47 {offsets = [0, 0], sizes = [128, 128], strides = [1, 1]} : vector<128x256xf32> to vector<128x128xf32>
    %49 = arith.addf %39, %48 : vector<128x128xf32>
    %50 = vector.extract_strided_slice %47 {offsets = [0, 128], sizes = [128, 128], strides = [1, 1]} : vector<128x256xf32> to vector<128x128xf32>
    %c127_i32_53 = arith.constant 127 : i32
    %51 = tpu.dynamic_rotate %50 by %c127_i32_53 dim 0 : vector<128x128xf32>, i32 -> vector<128x128xf32>
    %52 = arith.addf %49, %51 : vector<128x128xf32>
    %c0_54 = arith.constant 0 : index
    %c0_55 = arith.constant 0 : index
    %53 = vector.load %arg4[%c0_54, %c0_55] : memref<1x128xf32, #tpu.memory_space<vmem>>, vector<1x128xf32>
    %54 = vector.broadcast %53 : vector<1x128xf32> to vector<128x128xf32>
    %55 = arith.mulf %52, %54 : vector<128x128xf32>
    %c0_56 = arith.constant 0 : index
    %c0_57 = arith.constant 0 : index
    %56 = vector.load %arg5[%c0_56, %c0_57] : memref<1x128xf32, #tpu.memory_space<vmem>>, vector<1x128xf32>
    %57 = vector.broadcast %56 : vector<1x128xf32> to vector<128x128xf32>
    %58 = arith.addf %55, %57 : vector<128x128xf32>
    %cst_58 = arith.constant 0.000000e+00 : f32
    %59 = vector.broadcast %cst_58 : f32 to vector<128x128xf32>
    %60 = arith.cmpf oge, %58, %59 : vector<128x128xf32>
    %cst_59 = arith.constant 2.000000e-01 : f32
    %61 = vector.broadcast %cst_59 : f32 to vector<128x128xf32>
    %62 = arith.mulf %61, %58 : vector<128x128xf32>
    %63 = arith.select %60, %58, %62 : vector<128x128xi1>, vector<128x128xf32>
    %64 = vector.shape_cast %63 : vector<128x128xf32> to vector<8x16x128xf32>
    %65 = vector.extract_strided_slice %64 {offsets = [0, 0, 0], sizes = [8, 8, 128], strides = [1, 1, 1]} : vector<8x16x128xf32> to vector<8x8x128xf32>
    %66 = arith.truncf %65 : vector<8x8x128xf32> to vector<8x8x128xbf16>
    %c0_60 = arith.constant 0 : index
    %c0_61 = arith.constant 0 : index
    %c0_62 = arith.constant 0 : index
    %c0_63 = arith.constant 0 : index
    %67 = vector.load %arg6[%c0_60, %c0_61, %c0_62, %c0_63] : memref<1x8x8x128xbf16, #tpu.memory_space<vmem>>, vector<1x8x8x128xbf16>
    %68 = vector.shape_cast %67 : vector<1x8x8x128xbf16> to vector<8x8x128xbf16>
    %69 = vector.shape_cast %66 : vector<8x8x128xbf16> to vector<1x8x8x128xbf16>
    tpu.vector_store %arg6[%c0_60, %c0_61, %c0_62, %c0_63], %69 {strides = array<i32>} : memref<1x8x8x128xbf16, #tpu.memory_space<vmem>>, vector<1x8x8x128xbf16>,
    return
  }
  func.func @transform_0(%arg0: i32, %arg1: i32) -> (i32, i32, i32, i32, i32) {
    %c0_i32 = arith.constant 0 : i32
    %c0_i32_0 = arith.constant 0 : i32
    %c0_i32_1 = arith.constant 0 : i32
    %c0_i32_2 = arith.constant 0 : i32
    return %c0_i32, %arg0, %arg1, %c0_i32_0, %c0_i32_1 : i32, i32, i32, i32, i32
  }
  func.func @transform_1(%arg0: i32, %arg1: i32) -> (i32, i32, i32) {
    %c0_i32 = arith.constant 0 : i32
    %c0_i32_0 = arith.constant 0 : i32
    %c0_i32_1 = arith.constant 0 : i32
    %c0_i32_2 = arith.constant 0 : i32
    return %c0_i32, %c0_i32_0, %c0_i32_1 : i32, i32, i32
  }
  func.func @transform_2(%arg0: i32, %arg1: i32) -> (i32, i32) {
    %c0_i32 = arith.constant 0 : i32
    %c0_i32_0 = arith.constant 0 : i32
    %c0_i32_1 = arith.constant 0 : i32
    return %c0_i32, %c0_i32_0 : i32, i32
  }
  func.func @transform_3(%arg0: i32, %arg1: i32) -> (i32, i32) {
    %c0_i32 = arith.constant 0 : i32
    %c0_i32_0 = arith.constant 0 : i32
    %c0_i32_1 = arith.constant 0 : i32
    return %c0_i32, %c0_i32_0 : i32, i32
  }
  func.func @transform_4(%arg0: i32, %arg1: i32) -> (i32, i32, i32, i32) {
    %c0_i32 = arith.constant 0 : i32
    %c0_i32_0 = arith.constant 0 : i32
    %c0_i32_1 = arith.constant 0 : i32
    return %arg0, %arg1, %c0_i32, %c0_i32_0 : i32, i32, i32, i32
  }
}

</mosaic_0001>

<bundles_post_ra>
// kernel: down_forward.1
= control target key start
LH: loop header
LB: loop body
LE: loop exit
PB: predicated region body
PF: predicated region fallthrough
CT: control target
= control target key end

     0   :  { %s2157_s15 = smov 0   ;;  %s2159_s16 = smov 0   ;;  %s2726_s0 = inlined_call_operand.vmem [shape: bf16[4,2,1,144,4], index: 0, kind: input, shape index: {}]   ;;  %s2727_s1 = inlined_call_operand.vmem [shape: bf16[4,8,256], index: 1, kind: input, shape index: {}]   ;;  %s2728_s2 = inlined_call_operand.vmem [shape: f32[1,128], index: 2, kind: input, shape index: {}]   ;;  %s2729_s3 = inlined_call_operand.vmem [shape: f32[1,128], index: 3, kind: input, shape index: {}]   ;;  %s2730_s4 = inlined_call_operand.vmem [shape: bf16[2,8,8,128], index: 4, kind: output, shape index: {}]  }
   0x1   :  { %s2161_s17 = smov 0   ;;  %s2163_s18 = smov 0  }
   0x2   :  { %s2165_s19 = smov 0  }
   0x3 LB: > { %s26_s20 = sadd.s32 1, %s2124_s18  ;;  %p42_p1 = scmp.ne.s32.totalorder %s2116_s16, %s2112_s15  ;;  %s2128_s19 = sphi %s2165_s19, %s14_s19   ;;  %s2124_s18 = sphi %s2163_s18, %s2734_s18   ;;  %s2120_s17 = sphi %s2161_s17, %s2733_s17   ;;  %s2116_s16 = sphi %s2159_s16, %s2732_s16   ;;  %s2112_s15 = sphi %s2157_s15, %s2731_s15  }
   0x4   : > { %p28_p0 = scmp.ge.s32.totalorder %s26_s20, 2  ;;  %p43_p2 = scmp.eq.s32.totalorder %s2128_s19, 0 }
   0x5   : > { %s35_s22 = sadd.s32 1, %s2116_s16  ;;  %p1831_p5 = scmp.ge.s32.totalorder %s2128_s19, 2 }
   0x6   : > { %s2736_s20 = smov (%p28_p0, %s26_s20), 0  ;;  %p44_p3 = por %p43_p2, %p42_p1 }
   0x7   : > { %s30_s21 = ssub.s32 %s2124_s18, %s2736_s20  ;;  %168 = sbr.rel (%p1831_p5) target bundleno = 37 (0x25), region = 28 }
   0x8   : > { %p33_p4 = scmp.eq.s32.totalorder %s30_s21, 0 }
   0xa   : > { %s2192_s23 = scalar_select %p33_p4, %s2116_s16, %s35_s22  }
   0xe   : > { %171 = sbr.rel (!%p44_p3) target bundleno = 37 (0x25), region = 32  ;;  %s173_s24 = sand.u32 (%p44_p3), 1, %s2116_s16  }
   0xf   : > { %s2002_s25 = smul.u32 (%p44_p3), 72, %s2124_s18 }
  0x10   : > { %s2001_s26 = smul.u32 (%p44_p3), 288, %s173_s24 }
  0x11   : > { %s2200_s29 = scalar_lea.vmem (%p44_p3), %s2726_s0, %s2002_s25 }
  0x12   : > { %v196_v0 = vld [vmem:[%s2200_s29] sm:$0xff] (%p44_p3)   ;;  %v200_v1 = vld [vmem:[%s2200_s29 + $0x8] sm:$0xff] (%p44_p3)   ;;  %v204_v2 = vld [vmem:[%s2200_s29 + $0x10] sm:$0xff] (%p44_p3)   ;;  %s2205_s30 = scalar_lea.vmem (%p44_p3), [#allocation2], %s2001_s26 }
  0x13   : > { %197 = vst [vmem:[%s2205_s30] sm:$0xff] (%p44_p3), %v196_v0   ;;  %201 = vst [vmem:[%s2205_s30 + $0x8] sm:$0xff] (%p44_p3), %v200_v1   ;;  %v208_v3 = vld [vmem:[%s2200_s29 + $0x18] sm:$0xff] (%p44_p3)   ;;  %v212_v4 = vld [vmem:[%s2200_s29 + $0x20] sm:$0xff] (%p44_p3)  }
  0x14   : > { %205 = vst [vmem:[%s2205_s30 + $0x10] sm:$0xff] (%p44_p3), %v204_v2   ;;  %v216_v5 = vld [vmem:[%s2200_s29 + $0x28] sm:$0xff] (%p44_p3)   ;;  %209 = vst [vmem:[%s2205_s30 + $0x18] sm:$0xff] (%p44_p3), %v208_v3   ;;  %v220_v6 = vld [vmem:[%s2200_s29 + $0x30] sm:$0xff] (%p44_p3)  }
  0x15   : > { %213 = vst [vmem:[%s2205_s30 + $0x20] sm:$0xff] %v212_v4   ;;  %217 = vst [vmem:[%s2205_s30 + $0x28] sm:$0xff] %v216_v5   ;;  %v224_v7 = vld [vmem:[%s2200_s29 + $0x38] sm:$0xff]   ;;  %v228_v8 = vld [vmem:[%s2200_s29 + $0x40] sm:$0xff]  }
  0x16   : > { %221 = vst [vmem:[%s2205_s30 + $0x30] sm:$0xff] %v220_v6   ;;  %225 = vst [vmem:[%s2205_s30 + $0x38] sm:$0xff] %v224_v7   ;;  %v232_v9 = vld [vmem:[%s2200_s29 + $0x90] sm:$0xff]   ;;  %v236_v10 = vld [vmem:[%s2200_s29 + $0x98] sm:$0xff]  }
  0x17   : > { %229 = vst [vmem:[%s2205_s30 + $0x40] sm:$0xff] %v228_v8   ;;  %v240_v11 = vld [vmem:[%s2200_s29 + $0xa0] sm:$0xff]   ;;  %233 = vst [vmem:[%s2205_s30 + $0x48] sm:$0xff] %v232_v9   ;;  %v244_v12 = vld [vmem:[%s2200_s29 + $0xa8] sm:$0xff]  }
  0x18   : > { %237 = vst [vmem:[%s2205_s30 + $0x50] sm:$0xff] %v236_v10   ;;  %241 = vst [vmem:[%s2205_s30 + $0x58] sm:$0xff] %v240_v11   ;;  %v248_v13 = vld [vmem:[%s2200_s29 + $0xb0] sm:$0xff]   ;;  %v252_v14 = vld [vmem:[%s2200_s29 + $0xb8] sm:$0xff]  }
  0x19   : > { %245 = vst [vmem:[%s2205_s30 + $0x60] sm:$0xff] %v244_v12   ;;  %249 = vst [vmem:[%s2205_s30 + $0x68] sm:$0xff] %v248_v13   ;;  %v256_v15 = vld [vmem:[%s2200_s29 + $0xc0] sm:$0xff]   ;;  %v260_v16 = vld [vmem:[%s2200_s29 + $0xc8] sm:$0xff]  }
  0x1a   : > { %253 = vst [vmem:[%s2205_s30 + $0x70] sm:$0xff] %v252_v14   ;;  %v264_v17 = vld [vmem:[%s2200_s29 + $0xd0] sm:$0xff]   ;;  %257 = vst [vmem:[%s2205_s30 + $0x78] sm:$0xff] %v256_v15   ;;  %v268_v18 = vld [vmem:[%s2200_s29 + $0x120] sm:$0xff]  }
  0x1b   : > { %261 = vst [vmem:[%s2205_s30 + $0x80] sm:$0xff] %v260_v16   ;;  %265 = vst [vmem:[%s2205_s30 + $0x88] sm:$0xff] %v264_v17   ;;  %v272_v19 = vld [vmem:[%s2200_s29 + $0x128] sm:$0xff]   ;;  %v276_v20 = vld [vmem:[%s2200_s29 + $0x130] sm:$0xff]  }
  0x1c   : > { %269 = vst [vmem:[%s2205_s30 + $0x90] sm:$0xff] %v268_v18   ;;  %273 = vst [vmem:[%s2205_s30 + $0x98] sm:$0xff] %v272_v19   ;;  %v280_v21 = vld [vmem:[%s2200_s29 + $0x138] sm:$0xff]   ;;  %v284_v22 = vld [vmem:[%s2200_s29 + $0x140] sm:$0xff]  }
  0x1d   : > { %277 = vst [vmem:[%s2205_s30 + $0xa0] sm:$0xff] %v276_v20   ;;  %v288_v23 = vld [vmem:[%s2200_s29 + $0x148] sm:$0xff]   ;;  %281 = vst [vmem:[%s2205_s30 + $0xa8] sm:$0xff] %v280_v21   ;;  %v292_v24 = vld [vmem:[%s2200_s29 + $0x150] sm:$0xff]  }
  0x1e   : > { %285 = vst [vmem:[%s2205_s30 + $0xb0] sm:$0xff] %v284_v22   ;;  %289 = vst [vmem:[%s2205_s30 + $0xb8] sm:$0xff] %v288_v23   ;;  %v296_v25 = vld [vmem:[%s2200_s29 + $0x158] sm:$0xff]   ;;  %v300_v26 = vld [vmem:[%s2200_s29 + $0x160] sm:$0xff]  }
  0x1f   : > { %293 = vst [vmem:[%s2205_s30 + $0xc0] sm:$0xff] %v292_v24   ;;  %297 = vst [vmem:[%s2205_s30 + $0xc8] sm:$0xff] %v296_v25   ;;  %v304_v27 = vld [vmem:[%s2200_s29 + $0x1b0] sm:$0xff]   ;;  %v308_v28 = vld [vmem:[%s2200_s29 + $0x1b8] sm:$0xff]  }
  0x20   : > { %301 = vst [vmem:[%s2205_s30 + $0xd0] sm:$0xff] %v300_v26   ;;  %v312_v29 = vld [vmem:[%s2200_s29 + $0x1c0] sm:$0xff]   ;;  %305 = vst [vmem:[%s2205_s30 + $0xd8] sm:$0xff] %v304_v27   ;;  %v316_v30 = vld [vmem:[%s2200_s29 + $0x1c8] sm:$0xff]  }
  0x21   : > { %309 = vst [vmem:[%s2205_s30 + $0xe0] sm:$0xff] %v308_v28   ;;  %313 = vst [vmem:[%s2205_s30 + $0xe8] sm:$0xff] %v312_v29   ;;  %v320_v31 = vld [vmem:[%s2200_s29 + $0x1d0] sm:$0xff]   ;;  %v324_v32 = vld [vmem:[%s2200_s29 + $0x1d8] sm:$0xff]  }
  0x22   : > { %317 = vst [vmem:[%s2205_s30 + $0xf0] sm:$0xff] %v316_v30   ;;  %321 = vst [vmem:[%s2205_s30 + $0xf8] sm:$0xff] %v320_v31   ;;  %v328_v33 = vld [vmem:[%s2200_s29 + $0x1e0] sm:$0xff]   ;;  %v332_v34 = vld [vmem:[%s2200_s29 + $0x1e8] sm:$0xff]  }
  0x23   : > { %325 = vst [vmem:[%s2205_s30 + $0x100] sm:$0xff] %v324_v32   ;;  %v336_v35 = vld [vmem:[%s2200_s29 + $0x1f0] sm:$0xff]   ;;  %329 = vst [vmem:[%s2205_s30 + $0x108] sm:$0xff] %v328_v33  }
  0x24   : > { %333 = vst [vmem:[%s2205_s30 + $0x110] sm:$0xff] %v332_v34   ;;  %337 = vst [vmem:[%s2205_s30 + $0x118] sm:$0xff] %v336_v35  }
  0x25 PF: > { %p1833_p6 = scmp.ge.s32.totalorder %s2128_s19, 1  ;;  %p505_p7 = scmp.lt.s32.totalorder %s2128_s19, 3 }
  0x27   : > { %p506_p8 = pnand %p1833_p6, %p505_p7 }
  0x28   : > { %s512_s5 = sand.u32 (!%p506_p8), 1, %s2112_s15   ;;  %v656_v36 = vld [vmem:[%s2727_s1] sm:$0xff] (!%p506_p8)  ;;  %vm679_vm0 = vcmask (!%p506_p8), 1043456   ;;  %v2130_v39 = vmov (!%p506_p8), 0   ;;  %v1883_v40 = vld [vmem:[%s2727_s1 + $0x8] sm:$0xff] (!%p506_p8)  ;;  %v1922_v41 = vld [vmem:[%s2727_s1 + $0x10] sm:$0xff] (!%p506_p8) }
  0x29   : > { %509 = sbr.rel (%p506_p8) target bundleno = 516 (0x204), region = 73  ;;  %v1846_v37 = vcombine.high (!%p506_p8), %v656_v36, %v656_v36  ;;  %v1845_v38 = vcombine.low (!%p506_p8), %v656_v36, %v656_v36  ;;  %718 = vmatprep.mubr.bf16.mxu0 (!%p506_p8), %v2130_v39  ;;  %999 = vmatprep.mubr.bf16.mxu1 (!%p506_p8), %v2130_v39  ;;  %v1961_v42 = vld [vmem:[%s2727_s1 + $0x18] sm:$0xff] (!%p506_p8)  ;;  %v1885_v43 = vcombine.high (!%p506_p8), %v1883_v40, %v1883_v40  ;;  %s2131_s21 = smov (!%p506_p8), 4   ;;  %vm631_vm1 = vcmask (!%p506_p8), 31744  }
  0x2a   : > { %s2003_s8 = smul.u32 (!%p506_p8), 288, %s512_s5  ;;  %v1924_v44 = vcombine.high (!%p506_p8), %v1922_v41, %v1922_v41  ;;  %v1884_v45 = vcombine.low (!%p506_p8), %v1883_v40, %v1883_v40  ;;  %v1923_v46 = vcombine.low (!%p506_p8), %v1922_v41, %v1922_v41  ;;  %v1963_v48 = vcombine.high (!%p506_p8), %v1961_v42, %v1961_v42  ;;  %p542_p9 = scmp.lt.s32.totalorder (!%p506_p8), %s2120_s17, 1 }
  0x2b   : > { %1847 = vmatprep.subr.msk.bf16.mxu0 (!%p506_p8), %vm679_vm0, %v1846_v37  ;;  %v681_v47 = vsel (!%p506_p8), %vm679_vm0, %v1845_v38, 0  ;;  %v1962_v49 = vcombine.low (!%p506_p8), %v1961_v42, %v1961_v42  ;;  %1886 = vmatprep.subr.msk.bf16.mxu1 (!%p506_p8), %vm679_vm0, %v1885_v43  ;;  %vm662_vm2 = vcmask (!%p506_p8), 64512  }
  0x2c   : > { %s2295_s15 = scalar_lea.vmem (!%p506_p8), [#allocation2], %s2003_s8  ;;  %687 = vmatpush1.bf16.msra.mxu0 (!%p506_p8), %v681_v47  ;;  %v962_v51 = vsel (!%p506_p8), %vm679_vm0, %v1884_v45, 0  ;;  %v2307_v53 = vsel (!%p506_p8), %vm679_vm0, %v1923_v46, 0 }
  0x2d   : > { %v2298_v50 = vld [vmem:[%s2295_s15 + $0x8] sm:$0xff] (!%p506_p8)   ;;  %v2303_v52 = vld [vmem:[%s2295_s15 + $0x50] sm:$0xff] (!%p506_p8)   ;;  %1925 = vmatprep.subr.msk.bf16.mxu0 (!%p506_p8), %vm679_vm0, %v1924_v44  ;;  %968 = vmatpush1.bf16.msra.mxu1 (!%p506_p8), %v962_v51  ;;  %v2316_v55 = vsel (!%p506_p8), %vm679_vm0, %v1962_v49, 0  ;;  %v2321_v56 = vld [vmem:[%s2295_s15 + $0x58] sm:$0xff] (!%p506_p8)  }
  0x2e   : > { %615 = vrot.lane.b32.xlu0 (!%p506_p8), %v2298_v50, %s2131_s21  ;;  %v2312_v54 = vld [vmem:[%s2295_s15 + $0x10] sm:$0xff] (!%p506_p8)   ;;  %1964 = vmatprep.subr.msk.bf16.mxu1 (!%p506_p8), %vm679_vm0, %v1963_v48  ;;  %v2326_v57 = vld [vmem:[%s2295_s15 + $0x18] sm:$0xff] (!%p506_p8)   ;;  %v2331_v58 = vld [vmem:[%s2295_s15 + $0x60] sm:$0xff] (!%p506_p8)  }
  0x2f   : > { %617 = vrot.lane.b32.xlu1 (!%p506_p8), %v2312_v54, %s2131_s21  ;;  %v2336_v59 = vld [vmem:[%s2295_s15 + $0x20] sm:$0xff] (!%p506_p8)   ;;  %v2341_v60 = vld [vmem:[%s2295_s15 + $0x68] sm:$0xff] (!%p506_p8)   ;;  %v2351_v62 = vld [vmem:[%s2295_s15 + $0x70] sm:$0xff] (!%p506_p8)  }
  0x30   : > { %v2346_v61 = vld [vmem:[%s2295_s15 + $0x28] sm:$0xff]   ;;  %v2356_v63 = vld [vmem:[%s2295_s15 + $0x30] sm:$0xff]   ;;  %v2361_v0 = vld [vmem:[%s2295_s15 + $0x78] sm:$0xff]   ;;  %s2738_s17 = smov (!%p542_p9, %s2120_s17), 1 }
  0x31   : > { %v2366_v1 = vld [vmem:[%s2295_s15 + $0x38] sm:$0xff]   ;;  %v2371_v2 = vld [vmem:[%s2295_s15 + $0x80] sm:$0xff]   ;;  %v2061_v4 = vld [vmem:[%s2295_s15 + $0x88] sm:$0xff]   ;;  %s1977_s27 = sshll.u32 %s2738_s17, 5 }
  0x32   : > { %898 = vrot.lane.b32.xlu0 %v2303_v52, %s2131_s21  ;;  %v2060_v3 = vld [vmem:[%s2295_s15 + $0x40] sm:$0xff]   ;;  %v2381_v5 = vld [vmem:[%s2295_s15 + $0x98] sm:$0xff]   ;;  %v2395_v8 = vld [vmem:[%s2295_s15 + $0xe8] sm:$0xff]   ;;  %s2669_s30 = scalar_lea.vmem %s2730_s4, %s1977_s27 }
  0x33   : > { %900 = vrot.lane.b32.xlu1 %v2321_v56, %s2131_s21  ;;  %v2385_v6 = vld [vmem:[%s2295_s15 + $0xe0] sm:$0xff]   ;;  %v2400_v9 = vld [vmem:[%s2295_s15 + $0xa8] sm:$0xff]   ;;  %v2405_v10 = vld [vmem:[%s2295_s15 + $0xf0] sm:$0xff]  }
  0x34   : > { %v2388_v7 = vld [vmem:[%s2295_s15 + $0xa0] sm:$0xff]   ;;  %v2410_v11 = vld [vmem:[%s2295_s15 + $0xb0] sm:$0xff]   ;;  %v2415_v12 = vld [vmem:[%s2295_s15 + $0xf8] sm:$0xff]  }
  0x35   : > { %v2420_v13 = vld [vmem:[%s2295_s15 + $0xb8] sm:$0xff]   ;;  %v2425_v14 = vld [vmem:[%s2295_s15 + $0x100] sm:$0xff]   ;;  %v2435_v16 = vld [vmem:[%s2295_s15 + $0x108] sm:$0xff]  }
  0x36   : > { %619 = vrot.lane.b32.xlu0 %v2326_v57, %s2131_s21  ;;  %v2430_v15 = vld [vmem:[%s2295_s15 + $0xc0] sm:$0xff]   ;;  %v2440_v17 = vld [vmem:[%s2295_s15 + $0xc8] sm:$0xff]   ;;  %v2445_v18 = vld [vmem:[%s2295_s15 + $0x110] sm:$0xff]  }
  0x37   : > { %902 = vrot.lane.b32.xlu1 %v2331_v58, %s2131_s21  ;;  %v2085_v19 = vld [vmem:[%s2295_s15 + $0xd0] sm:$0xff]   ;;  %v2087_v20 = vld [vmem:[%s2295_s15 + $0x118] sm:$0xff]   ;;  %v2077_v21 = vld [vmem:[%s2295_s15] sm:$0xff]  }
  0x38   : > { %v2083_v24 = vld [vmem:[%s2295_s15 + $0x48] sm:$0xff]   ;;  %v2088_v47 = vld [vmem:[%s2295_s15 + $0x90] sm:$0xff]  }
  0x3a   : > { %621 = vrot.lane.b32.xlu0 %v2336_v59, %s2131_s21 }
  0x3b   : > { %904 = vrot.lane.b32.xlu1 %v2341_v60, %s2131_s21 }
  0x3e   : > { %623 = vrot.lane.b32.xlu0 %v2346_v61, %s2131_s21 }
  0x3f   : > { %906 = vrot.lane.b32.xlu1 %v2351_v62, %s2131_s21 }
  0x42   : > { %625 = vrot.lane.b32.xlu0 %v2356_v63, %s2131_s21 }
  0x43   : > { %908 = vrot.lane.b32.xlu1 %v2361_v0, %s2131_s21 }
  0x46   : > { %627 = vrot.lane.b32.xlu0 %v2366_v1, %s2131_s21 }
  0x47   : > { %910 = vrot.lane.b32.xlu1 %v2371_v2, %s2131_s21 }
  0x4a   : > { %629 = vrot.lane.b32.xlu0 %v2060_v3, %s2131_s21 }
  0x4b   : > { %912 = vrot.lane.b32.xlu1 %v2061_v4, %s2131_s21 }
  0x4e   : > { %1176 = vrot.lane.b32.xlu0 %v2381_v5, %s2131_s21 }
  0x4f   : > { %1454 = vrot.lane.b32.xlu1 %v2385_v6, %s2131_s21 }
  0x52   : > { %1178 = vrot.lane.b32.xlu0 %v2388_v7, %s2131_s21 }
  0x53   : > { %1456 = vrot.lane.b32.xlu1 %v2395_v8, %s2131_s21 }
  0x56   : > { %1180 = vrot.lane.b32.xlu0 %v2400_v9, %s2131_s21 }
  0x57   : > { %1458 = vrot.lane.b32.xlu1 %v2405_v10, %s2131_s21 }
  0x5a   : > { %1182 = vrot.lane.b32.xlu0 %v2410_v11, %s2131_s21 }
  0x5b   : > { %1460 = vrot.lane.b32.xlu1 %v2415_v12, %s2131_s21 }
  0x5e   : > { %1184 = vrot.lane.b32.xlu0 %v2420_v13, %s2131_s21 }
  0x5f   : > { %1462 = vrot.lane.b32.xlu1 %v2425_v14, %s2131_s21 }
  0x62   : > { %1186 = vrot.lane.b32.xlu0 %v2430_v15, %s2131_s21 }
  0x63   : > { %1464 = vrot.lane.b32.xlu1 %v2435_v16, %s2131_s21 }
  0x66   : > { %1188 = vrot.lane.b32.xlu0 %v2440_v17, %s2131_s21 }
  0x67   : > { %1466 = vrot.lane.b32.xlu1 %v2445_v18, %s2131_s21 }
  0x6a   : > { %1190 = vrot.lane.b32.xlu0 %v2085_v19, %s2131_s21 }
  0x6b   : > { %1468 = vrot.lane.b32.xlu1 %v2087_v20, %s2131_s21 }
  0xa0   : > { %v616_v22 = vpop.permute.xlu0 %615 }
  0xa1   : > { %v634_v23 = vsel %vm631_vm1, %v2077_v21, %v616_v22  ;;  %v618_v25 = vpop.permute.xlu1 %617 }
  0xa2   : > { %1848 = vmatmul.mubr.msk.bf16.vlgmr.msra.gmra.mrb[0].mxu0 %vm662_vm2, %v634_v23  ;;  %v637_v29 = vsel %vm631_vm1, %v2298_v50, %v618_v25  ;;  %v2089_v50 = vld [vmem:[%s2295_s15 + $0xd8] sm:$0xff]  }
  0xa3   : > { %1246 = vmatpush1.bf16.msra.mxu0 %v2307_v53  ;;  %727 = vmatprep.mubr.bf16.mxu0 %v2130_v39 }
  0xa4   : > { %v899_v26 = vpop.permute.xlu0 %898 }
  0xa5   : > { %v916_v27 = vsel %vm631_vm1, %v2083_v24, %v899_v26  ;;  %v901_v28 = vpop.permute.xlu1 %900 }
  0xa6   : > { %1887 = vmatmul.mubr.msk.bf16.vlgmr.msra.gmra.mrb[0].mxu1 %vm662_vm2, %v916_v27  ;;  %v919_v32 = vsel %vm631_vm1, %v2303_v52, %v901_v28 }
  0xa7   : > { %1524 = vmatpush1.bf16.msra.mxu1 %v2316_v55  ;;  %1008 = vmatprep.mubr.bf16.mxu1 %v2130_v39 }
  0xa8   : > { %v620_v30 = vpop.permute.xlu0 %619 }
  0xa9   : > { %v903_v31 = vpop.permute.xlu1 %902  ;;  %v640_v35 = vsel %vm631_vm1, %v2312_v54, %v620_v30 }
  0xaa   : > { %1849 = vmatmul.mubr.msk.bf16.gmra.mrb[4].mxu0 %vm662_vm2, %v637_v29  ;;  %v922_v38 = vsel %vm631_vm1, %v2321_v56, %v903_v31  ;;  %v815_v29 = vlaneseq }
  0xab   : > { %736 = vmatprep.mubr.bf16.mxu0 %v2130_v39 }
  0xac   : > { %v622_v33 = vpop.permute.xlu0 %621 }
  0xad   : > { %v905_v34 = vpop.permute.xlu1 %904  ;;  %v643_v42 = vsel %vm631_vm1, %v2326_v57, %v622_v33 }
  0xae   : > { %1888 = vmatmul.mubr.msk.bf16.gmra.mrb[4].mxu1 %vm662_vm2, %v919_v32  ;;  %v925_v45 = vsel %vm631_vm1, %v2331_v58, %v905_v34 }
  0xaf   : > { %1017 = vmatprep.mubr.bf16.mxu1 %v2130_v39 }
  0xb0   : > { %v624_v36 = vpop.permute.xlu0 %623 }
  0xb1   : > { %v907_v37 = vpop.permute.xlu1 %906  ;;  %v646_v49 = vsel %vm631_vm1, %v2336_v59, %v624_v36 }
  0xb2   : > { %1850 = vmatmul.mubr.msk.bf16.gmra.mrb[8].mxu0 %vm662_vm2, %v640_v35  ;;  %v928_v54 = vsel %vm631_vm1, %v2341_v60, %v907_v37 }
  0xb3   : > { %745 = vmatprep.mubr.bf16.mxu0 %v2130_v39 }
  0xb4   : > { %v626_v40 = vpop.permute.xlu0 %625 }
  0xb5   : > { %v909_v41 = vpop.permute.xlu1 %908  ;;  %v649_v56 = vsel %vm631_vm1, %v2346_v61, %v626_v40 }
  0xb6   : > { %1889 = vmatmul.mubr.msk.bf16.gmra.mrb[8].mxu1 %vm662_vm2, %v922_v38  ;;  %v931_v57 = vsel %vm631_vm1, %v2351_v62, %v909_v41 }
  0xb7   : > { %1026 = vmatprep.mubr.bf16.mxu1 %v2130_v39 }
  0xb8   : > { %v628_v43 = vpop.permute.xlu0 %627 }
  0xb9   : > { %v911_v44 = vpop.permute.xlu1 %910  ;;  %v652_v58 = vsel %vm631_vm1, %v2356_v63, %v628_v43 }
  0xba   : > { %1851 = vmatmul.mubr.msk.bf16.gmra.mrb[12].mxu0 %vm662_vm2, %v643_v42  ;;  %v934_v59 = vsel %vm631_vm1, %v2361_v0, %v911_v44 }
  0xbb   : > { %754 = vmatprep.mubr.bf16.mxu0 %v2130_v39 }
  0xbc   : > { %v630_v46 = vpop.permute.xlu0 %629 }
  0xbd   : > { %v913_v48 = vpop.permute.xlu1 %912  ;;  %v655_v60 = vsel %vm631_vm1, %v2366_v1, %v630_v46 }
  0xbe   : > { %1890 = vmatmul.mubr.msk.bf16.gmra.mrb[12].mxu1 %vm662_vm2, %v925_v45  ;;  %v937_v61 = vsel %vm631_vm1, %v2371_v2, %v913_v48 }
  0xbf   : > { %1035 = vmatprep.mubr.bf16.mxu1 %v2130_v39 }
  0xc0   : > { %v1177_v51 = vpop.permute.xlu0 %1176 }
  0xc1   : > { %v1194_v52 = vsel %vm631_vm1, %v2088_v47, %v1177_v51  ;;  %v1455_v53 = vpop.permute.xlu1 %1454 }
  0xc2   : > { %1852 = vmatmul.mubr.msk.bf16.gmra.mrb[16].mxu0 %vm662_vm2, %v646_v49  ;;  %v1472_v55 = vsel %vm631_vm1, %v2089_v50, %v1455_v53 }
  0xc3   : > { %763 = vmatprep.mubr.bf16.mxu0 %v2130_v39 }
  0xc4   : > { %v1179_v62 = vpop.permute.xlu0 %1178 }
  0xc5   : > { %v1197_v63 = vsel %vm631_vm1, %v2381_v5, %v1179_v62  ;;  %v1457_v0 = vpop.permute.xlu1 %1456 }
  0xc6   : > { %1891 = vmatmul.mubr.msk.bf16.gmra.mrb[16].mxu1 %vm662_vm2, %v928_v54  ;;  %v1475_v1 = vsel %vm631_vm1, %v2385_v6, %v1457_v0 }
  0xc7   : > { %1044 = vmatprep.mubr.bf16.mxu1 %v2130_v39 }
  0xc8   : > { %v1181_v2 = vpop.permute.xlu0 %1180 }
  0xc9   : > { %v1200_v3 = vsel %vm631_vm1, %v2388_v7, %v1181_v2  ;;  %v1459_v4 = vpop.permute.xlu1 %1458 }
  0xca   : > { %1853 = vmatmul.mubr.msk.bf16.gmra.mrb[20].mxu0 %vm662_vm2, %v649_v56  ;;  %v1478_v5 = vsel %vm631_vm1, %v2395_v8, %v1459_v4 }
  0xcb   : > { %772 = vmatprep.mubr.bf16.mxu0 %v2130_v39 }
  0xcc   : > { %v1183_v19 = vpop.permute.xlu0 %1182 }
  0xcd   : > { %v1203_v6 = vsel %vm631_vm1, %v2400_v9, %v1183_v19  ;;  %v1461_v20 = vpop.permute.xlu1 %1460 }
  0xce   : > { %1892 = vmatmul.mubr.msk.bf16.gmra.mrb[20].mxu1 %vm662_vm2, %v931_v57  ;;  %v1481_v7 = vsel %vm631_vm1, %v2405_v10, %v1461_v20 }
  0xcf   : > { %1053 = vmatprep.mubr.bf16.mxu1 %v2130_v39 }
  0xd0   : > { %v1185_v21 = vpop.permute.xlu0 %1184 }
  0xd1   : > { %v1206_v8 = vsel %vm631_vm1, %v2410_v11, %v1185_v21  ;;  %v1463_v22 = vpop.permute.xlu1 %1462 }
  0xd2   : > { %1854 = vmatmul.mubr.msk.bf16.gmra.mrb[24].mxu0 %vm662_vm2, %v652_v58  ;;  %v1484_v9 = vsel %vm631_vm1, %v2415_v12, %v1463_v22 }
  0xd3   : > { %781 = vmatprep.mubr.bf16.mxu0 %v2130_v39 }
  0xd4   : > { %v1187_v23 = vpop.permute.xlu0 %1186 }
  0xd5   : > { %v1209_v10 = vsel %vm631_vm1, %v2420_v13, %v1187_v23  ;;  %v1465_v24 = vpop.permute.xlu1 %1464 }
  0xd6   : > { %1893 = vmatmul.mubr.msk.bf16.gmra.mrb[24].mxu1 %vm662_vm2, %v934_v59  ;;  %v1487_v11 = vsel %vm631_vm1, %v2425_v14, %v1465_v24 }
  0xd7   : > { %1062 = vmatprep.mubr.bf16.mxu1 %v2130_v39 }
  0xd8   : > { %v1189_v25 = vpop.permute.xlu0 %1188 }
  0xd9   : > { %v1212_v12 = vsel %vm631_vm1, %v2430_v15, %v1189_v25  ;;  %v1467_v26 = vpop.permute.xlu1 %1466 }
  0xda   : > { %1855 = vmatmul.mubr.msk.bf16.gmra.mrb[28].mxu0 %vm662_vm2, %v655_v60  ;;  %v1490_v13 = vsel %vm631_vm1, %v2435_v16, %v1467_v26  ;;  %v2583_v16 = vshrl.u32 %v815_v29, 7 }
  0xdb   : > { %1277 = vmatprep.mubr.bf16.mxu0 %v2130_v39 }
  0xdc   : > { %v1191_v27 = vpop.permute.xlu0 %1190  ;;  %vm817_vm3 = vcmp.lt.s32.totalorder %v2583_v16, 7 }
  0xdd   : > { %v1215_v14 = vsel %vm631_vm1, %v2440_v17, %v1191_v27  ;;  %v1469_v28 = vpop.permute.xlu1 %1468 }
  0xde   : > { %1894 = vmatmul.mubr.msk.bf16.gmra.mrb[28].mxu1 %vm662_vm2, %v937_v61  ;;  %v1493_v15 = vsel %vm631_vm1, %v2445_v18, %v1469_v28 }
  0xdf   : > { %1555 = vmatprep.mubr.bf16.mxu1 %v2130_v39 }
  0xe2   : > { %1926 = vmatmul.mubr.msk.bf16.vlgmr.msra.gmra.mrb[32].mxu0 %vm662_vm2, %v1194_v52 }
  0xe3   : > { %1286 = vmatprep.mubr.bf16.mxu0 %v2130_v39 }
  0xe6   : > { %1965 = vmatmul.mubr.msk.bf16.vlgmr.msra.gmra.mrb[32].mxu1 %vm662_vm2, %v1472_v55 }
  0xe7   : > { %1564 = vmatprep.mubr.bf16.mxu1 %v2130_v39 }
  0xea   : > { %1927 = vmatmul.mubr.msk.bf16.gmra.mrb[36].mxu0 %vm662_vm2, %v1197_v63 }
  0xeb   : > { %1295 = vmatprep.mubr.bf16.mxu0 %v2130_v39 }
  0xee   : > { %1966 = vmatmul.mubr.msk.bf16.gmra.mrb[36].mxu1 %vm662_vm2, %v1475_v1 }
  0xef   : > { %1573 = vmatprep.mubr.bf16.mxu1 %v2130_v39 }
  0xf2   : > { %1928 = vmatmul.mubr.msk.bf16.gmra.mrb[40].mxu0 %vm662_vm2, %v1200_v3 }
  0xf3   : > { %1304 = vmatprep.mubr.bf16.mxu0 %v2130_v39 }
  0xf6   : > { %1967 = vmatmul.mubr.msk.bf16.gmra.mrb[40].mxu1 %vm662_vm2, %v1478_v5 }
  0xf7   : > { %1582 = vmatprep.mubr.bf16.mxu1 %v2130_v39 }
  0xfa   : > { %1929 = vmatmul.mubr.msk.bf16.gmra.mrb[44].mxu0 %vm662_vm2, %v1203_v6 }
  0xfb   : > { %1313 = vmatprep.mubr.bf16.mxu0 %v2130_v39 }
  0xfe   : > { %1968 = vmatmul.mubr.msk.bf16.gmra.mrb[44].mxu1 %vm662_vm2, %v1481_v7 }
  0xff   : > { %1591 = vmatprep.mubr.bf16.mxu1 %v2130_v39 }
 0x102   : > { %1930 = vmatmul.mubr.msk.bf16.gmra.mrb[48].mxu0 %vm662_vm2, %v1206_v8 }
 0x103   : > { %1322 = vmatprep.mubr.bf16.mxu0 %v2130_v39 }
 0x106   : > { %1969 = vmatmul.mubr.msk.bf16.gmra.mrb[48].mxu1 %vm662_vm2, %v1484_v9 }
 0x107   : > { %1600 = vmatprep.mubr.bf16.mxu1 %v2130_v39 }
 0x10a   : > { %1931 = vmatmul.mubr.msk.bf16.gmra.mrb[52].mxu0 %vm662_vm2, %v1209_v10 }
 0x10b   : > { %1331 = vmatprep.mubr.bf16.mxu0 %v2130_v39 }
 0x10e   : > { %1970 = vmatmul.mubr.msk.bf16.gmra.mrb[52].mxu1 %vm662_vm2, %v1487_v11 }
 0x10f   : > { %1609 = vmatprep.mubr.bf16.mxu1 %v2130_v39 }
 0x112   : > { %1932 = vmatmul.mubr.msk.bf16.gmra.mrb[56].mxu0 %vm662_vm2, %v1212_v12 }
 0x113   : > { %1340 = vmatprep.mubr.bf16.mxu0 %v2130_v39 }
 0x116   : > { %1971 = vmatmul.mubr.msk.bf16.gmra.mrb[56].mxu1 %vm662_vm2, %v1490_v13 }
 0x117   : > { %1618 = vmatprep.mubr.bf16.mxu1 %v2130_v39 }
 0x11a   : > { %1933 = vmatmul.mubr.msk.bf16.gmra.mrb[60].mxu0 %vm662_vm2, %v1215_v14 }
 0x11e   : > { %1972 = vmatmul.mubr.msk.bf16.gmra.mrb[60].mxu1 %vm662_vm2, %v1493_v15 }
 0x175   : > { %v720_v30 = vpop.f32.mrb[0].mxu0 }
 0x176   : > { %v722_v31 = vpop.f32.mrb[1].mxu0 }
 0x177   : > { %v724_v32 = vpop.f32.mrb[2].mxu0  ;;  %v799_v17 = vrot.slane %v722_v31, 1 }
 0x178   : > { %v725_v33 = vpop.f32.mrb[3].mxu0 }
 0x179   : > { %v800_v34 = vrot.slane %v725_v33, 1  ;;  %v1001_v39 = vpop.f32.mrb[0].mxu1 }
 0x17a   : > { %v1003_v35 = vpop.f32.mrb[1].mxu1 }
 0x17b   : > { %v825_v36 = vsel %vm817_vm3, %v799_v17, %v800_v34  ;;  %v1005_v37 = vpop.f32.mrb[2].mxu1  ;;  %v1080_v40 = vrot.slane %v1003_v35, 1 }
 0x17c   : > { %v826_v18 = vadd.f32 %v825_v36, %v720_v30  ;;  %v1006_v38 = vpop.f32.mrb[3].mxu1 }
 0x17d   : > { %v1081_v41 = vrot.slane %v1006_v38, 1  ;;  %v729_v42 = vpop.f32.mrb[4].mxu0 }
 0x17e   : > { %v1072_v43 = vadd.f32 %v1001_v39, %v826_v18  ;;  %v731_v44 = vpop.f32.mrb[5].mxu0 }
 0x17f   : > { %v733_v45 = vpop.f32.mrb[6].mxu0  ;;  %v1103_v46 = vsel %vm817_vm3, %v1080_v40, %v1081_v41  ;;  %v801_v49 = vrot.slane %v731_v44, 1 }
 0x180   : > { %v734_v47 = vpop.f32.mrb[7].mxu0  ;;  %v2590_v48 = vadd.f32 %v1103_v46, %v1072_v43 }
 0x181   : > { %v802_v50 = vrot.slane %v734_v47, 1  ;;  %v1010_v51 = vpop.f32.mrb[4].mxu1 }
 0x182   : > { %v1012_v52 = vpop.f32.mrb[5].mxu1 }
 0x183   : > { %v824_v53 = vsel %vm817_vm3, %v801_v49, %v802_v50  ;;  %v1014_v54 = vpop.f32.mrb[6].mxu1  ;;  %v1082_v57 = vrot.slane %v1012_v52, 1 }
 0x184   : > { %v827_v55 = vadd.f32 %v824_v53, %v729_v42  ;;  %v1015_v56 = vpop.f32.mrb[7].mxu1 }
 0x185   : > { %v1083_v58 = vrot.slane %v1015_v56, 1  ;;  %v738_v59 = vpop.f32.mrb[8].mxu0 }
 0x186   : > { %v1073_v60 = vadd.f32 %v1010_v51, %v827_v55  ;;  %v740_v61 = vpop.f32.mrb[9].mxu0 }
 0x187   : > { %v742_v62 = vpop.f32.mrb[10].mxu0  ;;  %v1102_v63 = vsel %vm817_vm3, %v1082_v57, %v1083_v58  ;;  %v803_v2 = vrot.slane %v740_v61, 1 }
 0x188   : > { %v743_v0 = vpop.f32.mrb[11].mxu0  ;;  %v2596_v1 = vadd.f32 %v1102_v63, %v1073_v60 }
 0x189   : > { %v804_v3 = vrot.slane %v743_v0, 1  ;;  %v1019_v4 = vpop.f32.mrb[8].mxu1 }
 0x18a   : > { %v1021_v5 = vpop.f32.mrb[9].mxu1 }
 0x18b   : > { %v823_v19 = vsel %vm817_vm3, %v803_v2, %v804_v3  ;;  %v1023_v6 = vpop.f32.mrb[10].mxu1  ;;  %v1084_v21 = vrot.slane %v1021_v5, 1 }
 0x18c   : > { %v828_v20 = vadd.f32 %v823_v19, %v738_v59  ;;  %v1024_v7 = vpop.f32.mrb[11].mxu1 }
 0x18d   : > { %v1085_v8 = vrot.slane %v1024_v7, 1  ;;  %v747_v22 = vpop.f32.mrb[12].mxu0 }
 0x18e   : > { %v1074_v9 = vadd.f32 %v1019_v4, %v828_v20  ;;  %v749_v23 = vpop.f32.mrb[13].mxu0 }
 0x18f   : > { %v751_v10 = vpop.f32.mrb[14].mxu0  ;;  %v1101_v24 = vsel %vm817_vm3, %v1084_v21, %v1085_v8  ;;  %v805_v12 = vrot.slane %v749_v23, 1 }
 0x190   : > { %v752_v11 = vpop.f32.mrb[15].mxu0  ;;  %v2602_v25 = vadd.f32 %v1101_v24, %v1074_v9 }
 0x191   : > { %v806_v26 = vrot.slane %v752_v11, 1  ;;  %v1028_v13 = vpop.f32.mrb[12].mxu1 }
 0x192   : > { %v1030_v27 = vpop.f32.mrb[13].mxu1 }
 0x193   : > { %v822_v14 = vsel %vm817_vm3, %v805_v12, %v806_v26  ;;  %v1032_v28 = vpop.f32.mrb[14].mxu1  ;;  %v1086_v30 = vrot.slane %v1030_v27, 1 }
 0x194   : > { %v829_v15 = vadd.f32 %v822_v14, %v747_v22  ;;  %v1033_v29 = vpop.f32.mrb[15].mxu1 }
 0x195   : > { %v1087_v31 = vrot.slane %v1033_v29, 1  ;;  %v756_v32 = vpop.f32.mrb[16].mxu0 }
 0x196   : > { %v1075_v33 = vadd.f32 %v1028_v13, %v829_v15  ;;  %v758_v17 = vpop.f32.mrb[17].mxu0 }
 0x197   : > { %v760_v34 = vpop.f32.mrb[18].mxu0  ;;  %v1100_v39 = vsel %vm817_vm3, %v1086_v30, %v1087_v31  ;;  %v807_v37 = vrot.slane %v758_v17, 1 }
 0x198   : > { %v761_v35 = vpop.f32.mrb[19].mxu0  ;;  %v2608_v36 = vadd.f32 %v1100_v39, %v1075_v33 }
 0x199   : > { %v808_v18 = vrot.slane %v761_v35, 1  ;;  %v1037_v38 = vpop.f32.mrb[16].mxu1 }
 0x19a   : > { %v1039_v40 = vpop.f32.mrb[17].mxu1 }
 0x19b   : > { %v821_v41 = vsel %vm817_vm3, %v807_v37, %v808_v18  ;;  %v1041_v42 = vpop.f32.mrb[18].mxu1  ;;  %v1088_v45 = vrot.slane %v1039_v40, 1 }
 0x19c   : > { %v830_v43 = vadd.f32 %v821_v41, %v756_v32  ;;  %v1042_v44 = vpop.f32.mrb[19].mxu1 }
 0x19d   : > { %v1089_v46 = vrot.slane %v1042_v44, 1  ;;  %v765_v47 = vpop.f32.mrb[20].mxu0 }
 0x19e   : > { %v1076_v49 = vadd.f32 %v1037_v38, %v830_v43  ;;  %v767_v50 = vpop.f32.mrb[21].mxu0 }
 0x19f   : > { %v769_v51 = vpop.f32.mrb[22].mxu0  ;;  %v1099_v52 = vsel %vm817_vm3, %v1088_v45, %v1089_v46  ;;  %v809_v55 = vrot.slane %v767_v50, 1 }
 0x1a0   : > { %v770_v53 = vpop.f32.mrb[23].mxu0  ;;  %v2614_v54 = vadd.f32 %v1099_v52, %v1076_v49 }
 0x1a1   : > { %v810_v56 = vrot.slane %v770_v53, 1  ;;  %v1046_v57 = vpop.f32.mrb[20].mxu1 }
 0x1a2   : > { %v1048_v58 = vpop.f32.mrb[21].mxu1 }
 0x1a3   : > { %v820_v59 = vsel %vm817_vm3, %v809_v55, %v810_v56  ;;  %v1050_v60 = vpop.f32.mrb[22].mxu1  ;;  %v1090_v63 = vrot.slane %v1048_v58, 1 }
 0x1a4   : > { %v831_v61 = vadd.f32 %v820_v59, %v765_v47  ;;  %v1051_v62 = vpop.f32.mrb[23].mxu1 }
 0x1a5   : > { %v1091_v0 = vrot.slane %v1051_v62, 1  ;;  %v774_v2 = vpop.f32.mrb[24].mxu0 }
 0x1a6   : > { %v1077_v3 = vadd.f32 %v1046_v57, %v831_v61  ;;  %v776_v4 = vpop.f32.mrb[25].mxu0 }
 0x1a7   : > { %v778_v5 = vpop.f32.mrb[26].mxu0  ;;  %v1098_v19 = vsel %vm817_vm3, %v1090_v63, %v1091_v0  ;;  %v811_v7 = vrot.slane %v776_v4, 1 }
 0x1a8   : > { %v779_v6 = vpop.f32.mrb[27].mxu0  ;;  %v2620_v20 = vadd.f32 %v1098_v19, %v1077_v3  ;;  %v2643_v3 = vld [vmem:[%s2728_s2] ss:$0 sm:$0xff] }
 0x1a9   : > { %v812_v21 = vrot.slane %v779_v6, 1  ;;  %v1055_v8 = vpop.f32.mrb[24].mxu1 }
 0x1aa   : > { %v1057_v22 = vpop.f32.mrb[25].mxu1 }
 0x1ab   : > { %v819_v9 = vsel %vm817_vm3, %v811_v7, %v812_v21  ;;  %v1059_v23 = vpop.f32.mrb[26].mxu1  ;;  %v1092_v11 = vrot.slane %v1057_v22, 1 }
 0x1ac   : > { %v832_v10 = vadd.f32 %v819_v9, %v774_v2  ;;  %v1060_v24 = vpop.f32.mrb[27].mxu1  ;;  %v2651_v9 = vld [vmem:[%s2729_s3] ss:$0 sm:$0xff] }
 0x1ad   : > { %v1093_v12 = vrot.slane %v1060_v24, 1  ;;  %v783_v26 = vpop.f32.mrb[28].mxu0 }
 0x1ae   : > { %v1078_v13 = vadd.f32 %v1055_v8, %v832_v10  ;;  %v785_v27 = vpop.f32.mrb[29].mxu0 }
 0x1af   : > { %v787_v14 = vpop.f32.mrb[30].mxu0  ;;  %v1097_v28 = vsel %vm817_vm3, %v1092_v11, %v1093_v12  ;;  %v813_v30 = vrot.slane %v785_v27, 1 }
 0x1b0   : > { %v788_v15 = vpop.f32.mrb[31].mxu0  ;;  %v2626_v29 = vadd.f32 %v1097_v28, %v1078_v13 }
 0x1b1   : > { %v814_v31 = vrot.slane %v788_v15, 1  ;;  %v1064_v32 = vpop.f32.mrb[28].mxu1 }
 0x1b2   : > { %v1066_v33 = vpop.f32.mrb[29].mxu1 }
 0x1b3   : > { %v818_v17 = vsel %vm817_vm3, %v813_v30, %v814_v31  ;;  %v1068_v34 = vpop.f32.mrb[30].mxu1  ;;  %v1094_v37 = vrot.slane %v1066_v33, 1 }
 0x1b4   : > { %v833_v39 = vadd.f32 %v818_v17, %v783_v26  ;;  %v1069_v35 = vpop.f32.mrb[31].mxu1 }
 0x1b5   : > { %v1095_v18 = vrot.slane %v1069_v35, 1  ;;  %v1279_v38 = vpop.f32.mrb[32].mxu0 }
 0x1b6   : > { %v1079_v40 = vadd.f32 %v1064_v32, %v833_v39  ;;  %v1350_v41 = vadd.f32 %v1279_v38, %v2590_v48  ;;  %v1281_v42 = vpop.f32.mrb[33].mxu0 }
 0x1b7   : > { %v1283_v43 = vpop.f32.mrb[34].mxu0  ;;  %v1096_v44 = vsel %vm817_vm3, %v1094_v37, %v1095_v18  ;;  %v1358_v47 = vrot.slane %v1281_v42, 1 }
 0x1b8   : > { %v1284_v45 = vpop.f32.mrb[35].mxu0  ;;  %v2633_v46 = vadd.f32 %v1096_v44, %v1079_v40 }
 0x1b9   : > { %v1359_v49 = vrot.slane %v1284_v45, 1  ;;  %v1557_v50 = vpop.f32.mrb[32].mxu1 }
 0x1ba   : > { %v1559_v51 = vpop.f32.mrb[33].mxu1 }
 0x1bb   : > { %v1381_v52 = vsel %vm817_vm3, %v1358_v47, %v1359_v49  ;;  %v1561_v53 = vpop.f32.mrb[34].mxu1  ;;  %v1636_v57 = vrot.slane %v1559_v51, 1 }
 0x1bc   : > { %v1382_v55 = vadd.f32 %v1381_v52, %v1350_v41  ;;  %v1562_v56 = vpop.f32.mrb[35].mxu1 }
 0x1bd   : > { %v1637_v48 = vrot.slane %v1562_v56, 1  ;;  %v1288_v58 = vpop.f32.mrb[36].mxu0 }
 0x1be   : > { %v1628_v59 = vadd.f32 %v1557_v50, %v1382_v55  ;;  %v1351_v60 = vadd.f32 %v1288_v58, %v2596_v1  ;;  %v1290_v61 = vpop.f32.mrb[37].mxu0 }
 0x1bf   : > { %v1659_v62 = vsel %vm817_vm3, %v1636_v57, %v1637_v48  ;;  %v1292_v63 = vpop.f32.mrb[38].mxu0  ;;  %v1360_v4 = vrot.slane %v1290_v61, 1 }
 0x1c0   : > { %v1660_v0 = vadd.f32 %v1659_v62, %v1628_v59  ;;  %v1293_v2 = vpop.f32.mrb[39].mxu0 }
 0x1c1   : > { %v1361_v5 = vrot.slane %v1293_v2, 1  ;;  %v1566_v19 = vpop.f32.mrb[36].mxu1 }
 0x1c2   : > { %v1568_v6 = vpop.f32.mrb[37].mxu1  ;;  %v1675_v21 = vmul.f32 %v2643_v3, %v1660_v0 }
 0x1c3   : > { %v1380_v1 = vsel %vm817_vm3, %v1360_v4, %v1361_v5  ;;  %v1570_v7 = vpop.f32.mrb[38].mxu1  ;;  %v1638_v23 = vrot.slane %v1568_v6, 1 }
 0x1c4   : > { %v1383_v8 = vadd.f32 %v1380_v1, %v1351_v60  ;;  %v1571_v22 = vpop.f32.mrb[39].mxu1  ;;  %v1690_v14 = vadd.f32 %v2651_v9, %v1675_v21 }
 0x1c5   : > { %v1639_v10 = vrot.slane %v1571_v22, 1  ;;  %v1297_v24 = vpop.f32.mrb[40].mxu0 }
 0x1c6   : > { %v1629_v11 = vadd.f32 %v1566_v19, %v1383_v8  ;;  %v1352_v12 = vadd.f32 %v1297_v24, %v2602_v25  ;;  %v1299_v26 = vpop.f32.mrb[41].mxu0  ;;  %v1706_v39 = vmul.f32 0.2, %v1690_v14  ;;  %vm1698_vm4 = vcmp.ge.f32.partialorder %v1690_v14, 0.0 }
 0x1c7   : > { %v1658_v13 = vsel %vm817_vm3, %v1638_v23, %v1639_v10  ;;  %v1301_v27 = vpop.f32.mrb[42].mxu0  ;;  %v1362_v30 = vrot.slane %v1299_v26, 1 }
 0x1c8   : > { %v1661_v28 = vadd.f32 %v1658_v13, %v1629_v11  ;;  %v1302_v15 = vpop.f32.mrb[43].mxu0  ;;  %v1714_v50 = vsel %vm1698_vm4, %v1690_v14, %v1706_v39 }
 0x1c9   : > { %v1363_v31 = vrot.slane %v1302_v15, 1  ;;  %v1575_v32 = vpop.f32.mrb[40].mxu1 }
 0x1ca   : > { %v1676_v33 = vmul.f32 %v2643_v3, %v1661_v28  ;;  %v1577_v17 = vpop.f32.mrb[41].mxu1 }
 0x1cb   : > { %v1379_v34 = vsel %vm817_vm3, %v1362_v30, %v1363_v31  ;;  %v1579_v25 = vpop.f32.mrb[42].mxu1  ;;  %v1640_v38 = vrot.slane %v1577_v17, 1 }
 0x1cc   : > { %v1691_v35 = vadd.f32 %v2651_v9, %v1676_v33  ;;  %v1384_v37 = vadd.f32 %v1379_v34, %v1352_v12  ;;  %v1580_v18 = vpop.f32.mrb[43].mxu1 }
 0x1cd   : > { %v1641_v40 = vrot.slane %v1580_v18, 1  ;;  %v1306_v41 = vpop.f32.mrb[44].mxu0 }
 0x1ce   : > { %vm1699_vm5 = vcmp.ge.f32.partialorder %v1691_v35, 0.0  ;;  %v1707_v42 = vmul.f32 0.2, %v1691_v35  ;;  %v1630_v43 = vadd.f32 %v1575_v32, %v1384_v37  ;;  %v1353_v44 = vadd.f32 %v1306_v41, %v2608_v36  ;;  %v1308_v45 = vpop.f32.mrb[45].mxu0 }
 0x1cf   : > { %v1657_v47 = vsel %vm817_vm3, %v1640_v38, %v1641_v40  ;;  %v1310_v49 = vpop.f32.mrb[46].mxu0  ;;  %v1364_v56 = vrot.slane %v1308_v45, 1 }
 0x1d0   : > { %v1715_v51 = vsel %vm1699_vm5, %v1691_v35, %v1707_v42  ;;  %v1662_v52 = vadd.f32 %v1657_v47, %v1630_v43  ;;  %v1311_v53 = vpop.f32.mrb[47].mxu0 }
 0x1d1   : > { %v1981_v55 = vpack.c.bf16 %v1715_v51, %v1714_v50  ;;  %v1365_v57 = vrot.slane %v1311_v53, 1  ;;  %v1584_v48 = vpop.f32.mrb[44].mxu1 }
 0x1d2   : > { %v1586_v36 = vpop.f32.mrb[45].mxu1  ;;  %v1677_v60 = vmul.f32 %v2643_v3, %v1662_v52 }
 0x1d3   : > { %1982 = vst [vmem:[%s2669_s30] sm:$0xff] %v1981_v55   ;;  %v1378_v58 = vsel %vm817_vm3, %v1364_v56, %v1365_v57  ;;  %v1588_v59 = vpop.f32.mrb[46].mxu1  ;;  %v1642_v63 = vrot.slane %v1586_v36, 1 }
 0x1d4   : > { %v1385_v61 = vadd.f32 %v1378_v58, %v1353_v44  ;;  %v1589_v62 = vpop.f32.mrb[47].mxu1  ;;  %v1692_v7 = vadd.f32 %v2651_v9, %v1677_v60 }
 0x1d5   : > { %v1643_v0 = vrot.slane %v1589_v62, 1  ;;  %v1315_v2 = vpop.f32.mrb[48].mxu0 }
 0x1d6   : > { %v1631_v4 = vadd.f32 %v1584_v48, %v1385_v61  ;;  %v1354_v5 = vadd.f32 %v1315_v2, %v2614_v54  ;;  %v1317_v19 = vpop.f32.mrb[49].mxu0  ;;  %v1708_v54 = vmul.f32 0.2, %v1692_v7  ;;  %vm1700_vm6 = vcmp.ge.f32.partialorder %v1692_v7, 0.0 }
 0x1d7   : > { %v1656_v6 = vsel %vm817_vm3, %v1642_v63, %v1643_v0  ;;  %v1319_v1 = vpop.f32.mrb[50].mxu0  ;;  %v1366_v22 = vrot.slane %v1317_v19, 1 }
 0x1d8   : > { %v1663_v21 = vadd.f32 %v1656_v6, %v1631_v4  ;;  %v1320_v8 = vpop.f32.mrb[51].mxu0  ;;  %v1716_v39 = vsel %vm1700_vm6, %v1692_v7, %v1708_v54 }
 0x1d9   : > { %v1367_v23 = vrot.slane %v1320_v8, 1  ;;  %v1593_v10 = vpop.f32.mrb[48].mxu1 }
 0x1da   : > { %v1678_v24 = vmul.f32 %v2643_v3, %v1663_v21  ;;  %v1595_v11 = vpop.f32.mrb[49].mxu1 }
 0x1db   : > { %v1377_v12 = vsel %vm817_vm3, %v1366_v22, %v1367_v23  ;;  %v1597_v26 = vpop.f32.mrb[50].mxu1  ;;  %v1644_v28 = vrot.slane %v1595_v11, 1 }
 0x1dc   : > { %v1693_v13 = vadd.f32 %v2651_v9, %v1678_v24  ;;  %v1386_v27 = vadd.f32 %v1377_v12, %v1354_v5  ;;  %v1598_v14 = vpop.f32.mrb[51].mxu1 }
 0x1dd   : > { %v1645_v15 = vrot.slane %v1598_v14, 1  ;;  %v1324_v30 = vpop.f32.mrb[52].mxu0 }
 0x1de   : > { %vm1701_vm7 = vcmp.ge.f32.partialorder %v1693_v13, 0.0  ;;  %v1709_v31 = vmul.f32 0.2, %v1693_v13  ;;  %v1632_v32 = vadd.f32 %v1593_v10, %v1386_v27  ;;  %v1355_v33 = vadd.f32 %v1324_v30, %v2620_v20  ;;  %v1326_v17 = vpop.f32.mrb[53].mxu0 }
 0x1df   : > { %v1655_v34 = vsel %vm817_vm3, %v1644_v28, %v1645_v15  ;;  %v1328_v25 = vpop.f32.mrb[54].mxu0  ;;  %v1368_v40 = vrot.slane %v1326_v17, 1 }
 0x1e0   : > { %v1717_v35 = vsel %vm1701_vm7, %v1693_v13, %v1709_v31  ;;  %v1664_v37 = vadd.f32 %v1655_v34, %v1632_v32  ;;  %v1329_v18 = vpop.f32.mrb[55].mxu0 }
 0x1e1   : > { %v1986_v38 = vpack.c.bf16 %v1717_v35, %v1716_v39  ;;  %v1369_v41 = vrot.slane %v1329_v18, 1  ;;  %v1602_v42 = vpop.f32.mrb[52].mxu1 }
 0x1e2   : > { %v1604_v43 = vpop.f32.mrb[53].mxu1  ;;  %v1679_v20 = vmul.f32 %v2643_v3, %v1664_v37 }
 0x1e3   : > { %1998 = vst [vmem:[%s2669_s30 + $0x8] sm:$0xff] %v1986_v38   ;;  %v1376_v44 = vsel %vm817_vm3, %v1368_v40, %v1369_v41  ;;  %v1606_v45 = vpop.f32.mrb[54].mxu1  ;;  %v1646_v50 = vrot.slane %v1604_v43, 1 }
 0x1e4   : > { %v1387_v47 = vadd.f32 %v1376_v44, %v1355_v33  ;;  %v1607_v49 = vpop.f32.mrb[55].mxu1  ;;  %v1694_v36 = vadd.f32 %v2651_v9, %v1679_v20 }
 0x1e5   : > { %v1647_v51 = vrot.slane %v1607_v49, 1  ;;  %v1333_v52 = vpop.f32.mrb[56].mxu0 }
 0x1e6   : > { %v1633_v53 = vadd.f32 %v1602_v42, %v1387_v47  ;;  %v1356_v55 = vadd.f32 %v1333_v52, %v2626_v29  ;;  %v1335_v56 = vpop.f32.mrb[57].mxu0  ;;  %v1710_v29 = vmul.f32 0.2, %v1694_v36  ;;  %vm1702_vm8 = vcmp.ge.f32.partialorder %v1694_v36, 0.0 }
 0x1e7   : > { %v1654_v57 = vsel %vm817_vm3, %v1646_v50, %v1647_v51  ;;  %v1337_v48 = vpop.f32.mrb[58].mxu0  ;;  %v1370_v60 = vrot.slane %v1335_v56, 1 }
 0x1e8   : > { %v1665_v58 = vadd.f32 %v1654_v57, %v1633_v53  ;;  %v1338_v59 = vpop.f32.mrb[59].mxu0  ;;  %v1718_v12 = vsel %vm1702_vm8, %v1694_v36, %v1710_v29 }
 0x1e9   : > { %v1371_v61 = vrot.slane %v1338_v59, 1  ;;  %v1611_v62 = vpop.f32.mrb[56].mxu1 }
 0x1ea   : > { %v1680_v63 = vmul.f32 %v2643_v3, %v1665_v58  ;;  %v1613_v0 = vpop.f32.mrb[57].mxu1 }
 0x1eb   : > { %v1375_v2 = vsel %vm817_vm3, %v1370_v60, %v1371_v61  ;;  %v1615_v4 = vpop.f32.mrb[58].mxu1  ;;  %v1648_v1 = vrot.slane %v1613_v0, 1 }
 0x1ec   : > { %v1695_v5 = vadd.f32 %v2651_v9, %v1680_v63  ;;  %v1388_v19 = vadd.f32 %v1375_v2, %v1356_v55  ;;  %v1616_v6 = vpop.f32.mrb[59].mxu1 }
 0x1ed   : > { %v1649_v7 = vrot.slane %v1616_v6, 1  ;;  %v1342_v21 = vpop.f32.mrb[60].mxu0 }
 0x1ee   : > { %vm1703_vm9 = vcmp.ge.f32.partialorder %v1695_v5, 0.0  ;;  %v1711_v8 = vmul.f32 0.2, %v1695_v5  ;;  %v1634_v22 = vadd.f32 %v1611_v62, %v1388_v19  ;;  %v1357_v23 = vadd.f32 %v1342_v21, %v2633_v46  ;;  %v1344_v10 = vpop.f32.mrb[61].mxu0 }
 0x1ef   : > { %v1653_v24 = vsel %vm817_vm3, %v1648_v1, %v1649_v7  ;;  %v1346_v11 = vpop.f32.mrb[62].mxu0  ;;  %v1372_v14 = vrot.slane %v1344_v10, 1 }
 0x1f0   : > { %v1719_v26 = vsel %vm1703_vm9, %v1695_v5, %v1711_v8  ;;  %v1666_v54 = vadd.f32 %v1653_v24, %v1634_v22  ;;  %v1347_v13 = vpop.f32.mrb[63].mxu0 }
 0x1f1   : > { %v1991_v27 = vpack.c.bf16 %v1719_v26, %v1718_v12  ;;  %v1373_v28 = vrot.slane %v1347_v13, 1  ;;  %v1620_v15 = vpop.f32.mrb[60].mxu1 }
 0x1f2   : > { %v1622_v30 = vpop.f32.mrb[61].mxu1  ;;  %v1681_v46 = vmul.f32 %v2643_v3, %v1666_v54 }
 0x1f3   : > { %1999 = vst [vmem:[%s2669_s30 + $0x10] sm:$0xff] %v1991_v27   ;;  %v1374_v31 = vsel %vm817_vm3, %v1372_v14, %v1373_v28  ;;  %v1624_v32 = vpop.f32.mrb[62].mxu1  ;;  %v1650_v34 = vrot.slane %v1622_v30, 1 }
 0x1f4   : > { %v1389_v33 = vadd.f32 %v1374_v31, %v1357_v23  ;;  %v1625_v17 = vpop.f32.mrb[63].mxu1  ;;  %v1696_v37 = vadd.f32 %v2651_v9, %v1681_v46 }
 0x1f5   : > { %v1651_v25 = vrot.slane %v1625_v17, 1 }
 0x1f6   : > { %v1635_v39 = vadd.f32 %v1620_v15, %v1389_v33  ;;  %v1712_v40 = vmul.f32 0.2, %v1696_v37  ;;  %vm1704_vm10 = vcmp.ge.f32.partialorder %v1696_v37, 0.0 }
 0x1f7   : > { %v1652_v35 = vsel %vm817_vm3, %v1650_v34, %v1651_v25 }
 0x1f8   : > { %v1667_v18 = vadd.f32 %v1652_v35, %v1635_v39  ;;  %v1720_v43 = vsel %vm1704_vm10, %v1696_v37, %v1712_v40 }
 0x1fa   : > { %v1682_v38 = vmul.f32 %v2643_v3, %v1667_v18 }
 0x1fc   : > { %v1697_v41 = vadd.f32 %v2651_v9, %v1682_v38 }
 0x1fe   : > { %vm1705_vm11 = vcmp.ge.f32.partialorder %v1697_v41, 0.0  ;;  %v1713_v42 = vmul.f32 0.2, %v1697_v41 }
 0x200   : > { %v1721_v44 = vsel %vm1705_vm11, %v1697_v41, %v1713_v42 }
 0x201   : > { %v1996_v45 = vpack.c.bf16 %v1721_v44, %v1720_v43 }
 0x203   : > { %2000 = vst [vmem:[%s2669_s30 + $0x18] sm:$0xff] %v1996_v45  }
 0x204 PF: > { %s14_s19 = sadd.s32 1, %s2128_s19   ;;  %s2731_s15 = smov %s2116_s16 }
 0x205   : > { %p11_p10 = scmp.ge.s32.totalorder %s14_s19, 4   ;;  %s2732_s16 = smov %s2192_s23 }
 0x206   : > { %s2733_s17 = smov %s2124_s18  ;;  %s2734_s18 = smov %s2736_s20 }
 0x207   :  { %13 = sbr.rel (!%p11_p10) target bundleno = 3 (0x3), region = 118 }

</bundles_post_ra>
